<compile_context>
chip_gen: v5e
topology: v5e:2x2
jax: 0.10.0
libtpu: 0.0.40
codegen_flags: <defaults>
</compile_context>

<pallas_src>
import functools

import jax
import jax.numpy as jnp
from jax.experimental import pallas as pl
from jax.experimental.pallas import tpu as pltpu


def _qnet_kernel(s_ref, a_ref, w1s_ref, w1a_ref, b1_ref, w2_ref, b2_ref,
                 w3_ref, b3_ref, o_ref):
    # --- l1 (linear only, no relu): fused "concat" via split weights --------
    # bf16 x bf16 MXU matmuls, f32 accumulation; bias added in f32.
    h1 = (jnp.dot(s_ref[...], w1s_ref[...], preferred_element_type=jnp.float32)
          + jnp.dot(a_ref[...], w1a_ref[...], preferred_element_type=jnp.float32)
          + b1_ref[...])                                          # (TB, 256) f32

    # --- l2 + relu -----------------------------------------------------------
    h2 = jnp.dot(h1.astype(jnp.bfloat16), w2_ref[...],
                 preferred_element_type=jnp.float32) + b2_ref[...]
    h2 = jnp.maximum(h2, 0.0)                                     # (TB, 128) f32

    # --- l3 (out_features = 1): VPU multiply + lane reduction, off the MXU ---
    q = jnp.sum(h2 * w3_ref[...], axis=-1, keepdims=True) + b3_ref[...]
    o_ref[...] = q.astype(o_ref.dtype)                            # (TB, 1)


@functools.partial(jax.jit, static_argnames=("block_b",))
def target_q_net_forward(state, action, params, *, block_b=512):
    """state: (B, 1, S) f32, action: (B, 1, A) f32 -> q: (B, 1) f32."""
    w1s, w1a, b1, w2, b2, w3, b3 = params

    # Layout plumbing only (squeeze + bf16 cast); concat is fused into the kernel.
    s = jnp.squeeze(state, axis=1).astype(jnp.bfloat16)           # (B, S)
    a = jnp.squeeze(action, axis=1).astype(jnp.bfloat16)          # (B, A)

    B, S = s.shape
    A = a.shape[1]
    tb = B if B <= block_b else block_b                           # batch tile
    grid = (pl.cdiv(B, tb),)

    # Weights/biases: constant block index -> stay resident in VMEM across the
    # whole batch grid (fetched once per call).
    resident = lambda shp: pl.BlockSpec(shp, lambda i: (0,) * len(shp))

    return pl.pallas_call(
        _qnet_kernel,
        out_shape=jax.ShapeDtypeStruct((B, 1), jnp.float32),
        grid_spec=pltpu.PrefetchScalarGridSpec(
            num_scalar_prefetch=0,
            grid=grid,
            in_specs=[
                pl.BlockSpec((tb, S), lambda i: (i, 0)),          # state tile
                pl.BlockSpec((tb, A), lambda i: (i, 0)),          # action tile
                resident(w1s.shape), resident(w1a.shape), resident(b1.shape),
                resident(w2.shape), resident(b2.shape),
                resident(w3.shape), resident(b3.shape),
            ],
            out_specs=pl.BlockSpec((tb, 1), lambda i: (i, 0)),
        ),
        compiler_params=pltpu.CompilerParams(
            dimension_semantics=("parallel",)),                   # v7x: 2 TCs
    )(s, a, w1s, w1a, b1, w2, b2, w3, b3)


# ----------------------------- parameters ------------------------------------

def init_params_torch_layout(key, state_dim, action_dim):
    """f32 params in PyTorch layout: (W1(256,Din), b1(256), W2(128,256),
    b2(128), W3(1,128), b3(1)), nn.Linear default init U[-1/sqrt(fan_in), +]."""
    din = state_dim + action_dim
    dims = [(din, 256), (256, 128), (128, 1)]
    keys = jax.random.split(key, 2 * len(dims))
    params = []
    for i, (fan_in, fan_out) in enumerate(dims):
        bound = float(fan_in) ** -0.5
        w = jax.random.uniform(keys[2 * i], (fan_out, fan_in), jnp.float32,
                               minval=-bound, maxval=bound)
        b = jax.random.uniform(keys[2 * i + 1], (fan_out,), jnp.float32,
                               minval=-bound, maxval=bound)
        params += [w, b]
    return tuple(params)


def pack_params(params_f32, state_dim):
    """Convert PyTorch-layout f32 params to the kernel layout:
    split/transposed bf16 matmul weights, f32 biases, f32 row for l3."""
    W1, b1, W2, b2, W3, b3 = params_f32
    w1t = W1.T                                                    # (Din, 256)
    return (
        w1t[:state_dim].astype(jnp.bfloat16),                     # w1_s (S, 256)
        w1t[state_dim:].astype(jnp.bfloat16),                     # w1_a (A, 256)
        b1.reshape(1, -1).astype(jnp.float32),                    # (1, 256)
        W2.T.astype(jnp.bfloat16),                                # (256, 128)
        b2.reshape(1, -1).astype(jnp.float32),                    # (1, 128)
        W3.astype(jnp.float32),                                   # (1, 128) row
        b3.reshape(1, 1).astype(jnp.float32),                     # (1, 1)
    )


def reference_forward(state, action, params_f32, *, mirror_bf16):
    """Plain-JAX reference (same math as the PyTorch module). If mirror_bf16,
    quantize at the same points as the kernel so only accumulation order differs."""
    W1, b1, W2, b2, W3, b3 = params_f32
    x = jnp.concatenate([jnp.squeeze(state, 1), jnp.squeeze(action, 1)], axis=1)
    q = (lambda t: t.astype(jnp.bfloat16).astype(jnp.float32)) if mirror_bf16 \
        else (lambda t: t)
    h1 = q(x) @ q(W1).T + b1                                      # no relu
    h2 = jnp.maximum(q(h1) @ q(W2).T + b2, 0.0)
    return h2 @ W3.T + b3


if __name__ == "__main__":
    B, state_dim, action_dim = 8, 16, 4
    key = jax.random.PRNGKey(0)
    k_s, k_a, k_p = jax.random.split(key, 3)

    state = jax.random.normal(k_s, (B, 1, state_dim), jnp.float32)
    action = jax.random.normal(k_a, (B, 1, action_dim), jnp.float32)

    params_f32 = init_params_torch_layout(k_p, state_dim, action_dim)
    params = pack_params(params_f32, state_dim)

    q_kernel = target_q_net_forward(state, action, params)
    jax.block_until_ready(q_kernel)

    # Tight check vs. bf16-mirrored reference (only accumulation order differs).
    q_mirror = reference_forward(state, action, params_f32, mirror_bf16=True)
    # Loose sanity check vs. pure-f32 reference (bounds bf16 quantization error).
    q_f32 = reference_forward(state, action, params_f32, mirror_bf16=False)

    assert q_kernel.shape == (B, 1)
    assert jnp.allclose(q_kernel, q_mirror, atol=2e-3, rtol=2e-3)
    assert jnp.allclose(q_kernel, q_f32, atol=2e-2, rtol=2e-2)

    print("KERNEL_OK")
</pallas_src>

<mosaic_0001>
module attributes {stable_mosaic.version = 11 : i64} {
  func.func @_qnet_kernel(%arg0: i32, %arg1: memref<8x16xbf16, #tpu.memory_space<vmem>>, %arg2: memref<8x4xbf16, #tpu.memory_space<vmem>>, %arg3: memref<16x256xbf16, #tpu.memory_space<vmem>>, %arg4: memref<4x256xbf16, #tpu.memory_space<vmem>>, %arg5: memref<1x256xf32, #tpu.memory_space<vmem>>, %arg6: memref<256x128xbf16, #tpu.memory_space<vmem>>, %arg7: memref<1x128xf32, #tpu.memory_space<vmem>>, %arg8: memref<1x128xf32, #tpu.memory_space<vmem>>, %arg9: memref<1x1xf32, #tpu.memory_space<vmem>>, %arg10: memref<8x1xf32, #tpu.memory_space<vmem>>) attributes {dimension_semantics = [#tpu.dimension_semantics<parallel>], iteration_bounds = array<i64: 1>, scalar_prefetch = 0 : i64, scratch_operands = 0 : i64, tpu.core_type = #tpu.core_type<tc>, window_params = [{transform_indices = @transform_0, window_bounds = array<i64: 8, 16>}, {transform_indices = @transform_1, window_bounds = array<i64: 8, 4>}, {pipeline_mode = #tpu.pipeline_mode<synchronous>, transform_indices = @transform_2, window_bounds = array<i64: 16, 256>}, {pipeline_mode = #tpu.pipeline_mode<synchronous>, transform_indices = @transform_3, window_bounds = array<i64: 4, 256>}, {pipeline_mode = #tpu.pipeline_mode<synchronous>, transform_indices = @transform_4, window_bounds = array<i64: 1, 256>}, {pipeline_mode = #tpu.pipeline_mode<synchronous>, transform_indices = @transform_5, window_bounds = array<i64: 256, 128>}, {pipeline_mode = #tpu.pipeline_mode<synchronous>, transform_indices = @transform_6, window_bounds = array<i64: 1, 128>}, {pipeline_mode = #tpu.pipeline_mode<synchronous>, transform_indices = @transform_7, window_bounds = array<i64: 1, 128>}, {pipeline_mode = #tpu.pipeline_mode<synchronous>, transform_indices = @transform_8, window_bounds = array<i64: 1, 1>}, {transform_indices = @transform_9, window_bounds = array<i64: 8, 1>}]} {
    %c0 = arith.constant 0 : index
    %c0_0 = arith.constant 0 : index
    %0 = vector.load %arg1[%c0, %c0_0] : memref<8x16xbf16, #tpu.memory_space<vmem>>, vector<8x16xbf16>
    %c0_1 = arith.constant 0 : index
    %c0_2 = arith.constant 0 : index
    %1 = vector.load %arg3[%c0_1, %c0_2] : memref<16x256xbf16, #tpu.memory_space<vmem>>, vector<16x256xbf16>
    %cst = arith.constant dense<0.000000e+00> : vector<8x256xf32>
    %2 = tpu.matmul %0, %1, %cst {dimension_numbers = #tpu.dot_dimension_numbers<[1], [0], [0], [1], [0, 0, 1, 1], [], []>} : vector<8x16xbf16>, vector<16x256xbf16>, vector<8x256xf32> -> vector<8x256xf32>
    %c0_3 = arith.constant 0 : index
    %c0_4 = arith.constant 0 : index
    %3 = vector.load %arg2[%c0_3, %c0_4] : memref<8x4xbf16, #tpu.memory_space<vmem>>, vector<8x4xbf16>
    %c0_5 = arith.constant 0 : index
    %c0_6 = arith.constant 0 : index
    %4 = vector.load %arg4[%c0_5, %c0_6] : memref<4x256xbf16, #tpu.memory_space<vmem>>, vector<4x256xbf16>
    %cst_7 = arith.constant dense<0.000000e+00> : vector<8x256xf32>
    %5 = tpu.matmul %3, %4, %cst_7 {dimension_numbers = #tpu.dot_dimension_numbers<[1], [0], [0], [1], [0, 0, 1, 1], [], []>} : vector<8x4xbf16>, vector<4x256xbf16>, vector<8x256xf32> -> vector<8x256xf32>
    %6 = arith.addf %2, %5 : vector<8x256xf32>
    %c0_8 = arith.constant 0 : index
    %c0_9 = arith.constant 0 : index
    %7 = vector.load %arg5[%c0_8, %c0_9] : memref<1x256xf32, #tpu.memory_space<vmem>>, vector<1x256xf32>
    %8 = vector.broadcast %7 : vector<1x256xf32> to vector<8x256xf32>
    %9 = arith.addf %6, %8 : vector<8x256xf32>
    %10 = arith.truncf %9 : vector<8x256xf32> to vector<8x256xbf16>
    %c0_10 = arith.constant 0 : index
    %c0_11 = arith.constant 0 : index
    %11 = vector.load %arg6[%c0_10, %c0_11] : memref<256x128xbf16, #tpu.memory_space<vmem>>, vector<256x128xbf16>
    %cst_12 = arith.constant dense<0.000000e+00> : vector<8x128xf32>
    %12 = tpu.matmul %10, %11, %cst_12 {dimension_numbers = #tpu.dot_dimension_numbers<[1], [0], [0], [1], [0, 0, 1, 1], [], []>} : vector<8x256xbf16>, vector<256x128xbf16>, vector<8x128xf32> -> vector<8x128xf32>
    %c0_13 = arith.constant 0 : index
    %c0_14 = arith.constant 0 : index
    %13 = vector.load %arg7[%c0_13, %c0_14] : memref<1x128xf32, #tpu.memory_space<vmem>>, vector<1x128xf32>
    %14 = vector.broadcast %13 : vector<1x128xf32> to vector<8x128xf32>
    %15 = arith.addf %12, %14 : vector<8x128xf32>
    %cst_15 = arith.constant 0.000000e+00 : f32
    %16 = vector.broadcast %cst_15 : f32 to vector<8x128xf32>
    %17 = arith.maximumf %15, %16 : vector<8x128xf32>
    %c0_16 = arith.constant 0 : index
    %c0_17 = arith.constant 0 : index
    %18 = vector.load %arg8[%c0_16, %c0_17] : memref<1x128xf32, #tpu.memory_space<vmem>>, vector<1x128xf32>
    %19 = vector.broadcast %18 : vector<1x128xf32> to vector<8x128xf32>
    %20 = arith.mulf %17, %19 : vector<8x128xf32>
    %cst_18 = arith.constant dense<0.000000e+00> : vector<8xf32>
    %21 = vector.multi_reduction <add>, %20, %cst_18 [1] : vector<8x128xf32> to vector<8xf32>
    %22 = vector.shape_cast %21 : vector<8xf32> to vector<8x1xf32>
    %c0_19 = arith.constant 0 : index
    %c0_20 = arith.constant 0 : index
    %23 = vector.load %arg9[%c0_19, %c0_20] : memref<1x1xf32, #tpu.memory_space<vmem>>, vector<1x1xf32>
    %24 = vector.broadcast %23 : vector<1x1xf32> to vector<8x1xf32>
    %25 = arith.addf %22, %24 : vector<8x1xf32>
    %c0_21 = arith.constant 0 : index
    %c0_22 = arith.constant 0 : index
    %26 = vector.load %arg10[%c0_21, %c0_22] : memref<8x1xf32, #tpu.memory_space<vmem>>, vector<8x1xf32>
    tpu.vector_store %arg10[%c0_21, %c0_22], %25 {strides = array<i32>} : memref<8x1xf32, #tpu.memory_space<vmem>>, vector<8x1xf32>,
    return
  }
  func.func @transform_0(%arg0: i32) -> (i32, i32) {
    %c0_i32 = arith.constant 0 : i32
    %c0_i32_0 = arith.constant 0 : i32
    return %arg0, %c0_i32 : i32, i32
  }
  func.func @transform_1(%arg0: i32) -> (i32, i32) {
    %c0_i32 = arith.constant 0 : i32
    %c0_i32_0 = arith.constant 0 : i32
    return %arg0, %c0_i32 : i32, i32
  }
  func.func @transform_2(%arg0: i32) -> (i32, i32) {
    %c0_i32 = arith.constant 0 : i32
    %c0_i32_0 = arith.constant 0 : i32
    %c0_i32_1 = arith.constant 0 : i32
    return %c0_i32, %c0_i32_0 : i32, i32
  }
  func.func @transform_3(%arg0: i32) -> (i32, i32) {
    %c0_i32 = arith.constant 0 : i32
    %c0_i32_0 = arith.constant 0 : i32
    %c0_i32_1 = arith.constant 0 : i32
    return %c0_i32, %c0_i32_0 : i32, i32
  }
  func.func @transform_4(%arg0: i32) -> (i32, i32) {
    %c0_i32 = arith.constant 0 : i32
    %c0_i32_0 = arith.constant 0 : i32
    %c0_i32_1 = arith.constant 0 : i32
    return %c0_i32, %c0_i32_0 : i32, i32
  }
  func.func @transform_5(%arg0: i32) -> (i32, i32) {
    %c0_i32 = arith.constant 0 : i32
    %c0_i32_0 = arith.constant 0 : i32
    %c0_i32_1 = arith.constant 0 : i32
    return %c0_i32, %c0_i32_0 : i32, i32
  }
  func.func @transform_6(%arg0: i32) -> (i32, i32) {
    %c0_i32 = arith.constant 0 : i32
    %c0_i32_0 = arith.constant 0 : i32
    %c0_i32_1 = arith.constant 0 : i32
    return %c0_i32, %c0_i32_0 : i32, i32
  }
  func.func @transform_7(%arg0: i32) -> (i32, i32) {
    %c0_i32 = arith.constant 0 : i32
    %c0_i32_0 = arith.constant 0 : i32
    %c0_i32_1 = arith.constant 0 : i32
    return %c0_i32, %c0_i32_0 : i32, i32
  }
  func.func @transform_8(%arg0: i32) -> (i32, i32) {
    %c0_i32 = arith.constant 0 : i32
    %c0_i32_0 = arith.constant 0 : i32
    %c0_i32_1 = arith.constant 0 : i32
    return %c0_i32, %c0_i32_0 : i32, i32
  }
  func.func @transform_9(%arg0: i32) -> (i32, i32) {
    %c0_i32 = arith.constant 0 : i32
    %c0_i32_0 = arith.constant 0 : i32
    return %arg0, %c0_i32 : i32, i32
  }
}

</mosaic_0001>

<bundles_post_ra>
// kernel: target_q_net_forward.1
= control target key start
LH: loop header
LB: loop body
LE: loop exit
PB: predicated region body
PF: predicated region fallthrough
CT: control target
= control target key end

     0   :  { %s541_s0 = inlined_call_operand.vmem [shape: bf16[8,16], index: 0, kind: input, shape index: {}]   ;;  %s542_s1 = inlined_call_operand.vmem [shape: bf16[8,4], index: 1, kind: input, shape index: {}]   ;;  %s543_s2 = inlined_call_operand.vmem [shape: bf16[16,256], index: 2, kind: input, shape index: {}]   ;;  %s544_s3 = inlined_call_operand.vmem [shape: bf16[4,256], index: 3, kind: input, shape index: {}]   ;;  %s545_s4 = inlined_call_operand.vmem [shape: f32[1,256], index: 4, kind: input, shape index: {}]   ;;  %s546_s5 = inlined_call_operand.hbm [shape: bf16[256,128], index: 5, kind: input, shape index: {}]   ;;  %s547_s6 = inlined_call_operand.vmem [shape: f32[1,128], index: 6, kind: input, shape index: {}]   ;;  %s548_s7 = inlined_call_operand.vmem [shape: f32[1,128], index: 7, kind: input, shape index: {}]   ;;  %s549_s8 = inlined_call_operand.<no memory space> [shape: f32[1,1], index: 8, kind: input, shape index: {}]   ;;  %s550_s9 = inlined_call_operand.vmem [shape: f32[8,1], index: 9, kind: output, shape index: {}]  }
   0x1   :  { %v14_v0 = vstv %s549_s8 }
   0x2   :  { %15 = vst [vmem:[#allocation2] sm:$0x1] %v14_v0 }
   0x3   :  { %16 = vsyncpa [#allocation4], 0  ;;  %s31_s13 = sshll.u32 %s546_s5, 4  ;;  %s449_s14 = smov [#allocation3]   ;;  %s32_s13 = int_to_ptr.hbm [resolvable:$true] %s31_s13 }
   0x4   :  { %s33_s15 = sshll.u32 %s449_s14, 4  ;;  %s450_s16 = smov 64   ;;  %s34_s15 = int_to_ptr.vmem [resolvable:$true] %s33_s15 }
   0x5   :  { %s451_s17 = smov 4  }
   0x6   :  { %39 = dma.hbm_to_vmem [thread:$0]  %s32_s13, 2048, %s34_s15, [#allocation4], %s450_s16, %s450_s16, %s451_s17  }
   0x7   :  { %447 = dma.done.wait [#allocation4], 2048  }
   0x8   :  { %448 = vsyncadd [#allocation4], 4294965248  ;;  %v55_v1 = vld [vmem:[%s544_s3] sm:$0xf]  ;;  %v400_v3 = vld [vmem:[%s543_s2 + $0x4] sm:$0xf0] }
   0x9   :  { %57 = vst [vmem:[#allocation1] ss:$4 sm:$0xff] %v55_v1  ;;  %v327_v2 = vld [vmem:[%s543_s2] sm:$0xf]  ;;  %v399_v4 = vld [vmem:[%s543_s2 + $0x4] sm:$0xf] }
   0xa   :  { %v408_v5 = vld [vmem:[#allocation3 + $0x38] sm:$0xff]  ;;  %v329_v6 = vld [vmem:[%s543_s2 + $0x8] sm:$0xf0]  ;;  %v407_v8 = vld [vmem:[#allocation3 + $0x30] sm:$0xff]  ;;  %vm64_vm0 = vcmask 1041408   ;;  %v328_v10 = vor.u32 %v400_v3, %v327_v2  ;;  %vm60_vm1 = vcmask 31744  }
   0xb   :  { %v416_v7 = vld [vmem:[#allocation3 + $0x78] sm:$0xff]  ;;  %277 = vmatpush.bf16.msra.mxu0 %v408_v5  ;;  %v415_v9 = vld [vmem:[#allocation3 + $0x70] sm:$0xff]  ;;  %v332_v11 = vor.u32 %v399_v4, %v329_v6  ;;  %vm105_vm2 = vcmask 130048   ;;  %v406_v18 = vld [vmem:[#allocation3 + $0x28] sm:$0xff]  ;;  %vm316_vm3 = vcmask 7168  }
   0xc   :  { %290 = vmatpush.bf16.msra.mxu1 %v416_v7  ;;  %v54_v16 = vld [vmem:[%s542_s1] sm:$0xf]  ;;  %v414_v19 = vld [vmem:[#allocation3 + $0x68] sm:$0xff]  ;;  %v405_v20 = vld [vmem:[#allocation3 + $0x20] sm:$0xff] }
   0xd   :  { %v51_v17 = vld [vmem:[%s541_s0] sm:$0xf]  ;;  %v413_v21 = vld [vmem:[#allocation3 + $0x60] sm:$0xff]  ;;  %v402_v26 = vld [vmem:[#allocation3 + $0x8] sm:$0xff] }
   0xe   :  { %v404_v22 = vld [vmem:[#allocation3 + $0x18] sm:$0xff]  ;;  %v403_v24 = vld [vmem:[#allocation3 + $0x10] sm:$0xff]  ;;  %v410_v27 = vld [vmem:[#allocation3 + $0x48] sm:$0xff] }
   0xf   :  { %278 = vmatpush.bf16.msra.mxu0 %v407_v8  ;;  %v412_v23 = vld [vmem:[#allocation3 + $0x58] sm:$0xff]  ;;  %v411_v25 = vld [vmem:[#allocation3 + $0x50] sm:$0xff]  ;;  %v401_v28 = vld [vmem:[#allocation3] sm:$0xff] }
  0x10   :  { %v58_v12 = vld.sshfl [vmem:[#allocation1] sm:$0xff pattern:$0x73625140]  ;;  %v59_v13 = vld.sshfl [vmem:[#allocation1 + $0x8] sm:$0xff pattern:$0x73625140]  ;;  %291 = vmatpush.bf16.msra.mxu1 %v415_v9 }
  0x11   :  { %v65_v14 = vsel %vm64_vm0, %v58_v12, 0  ;;  %v67_v15 = vsel %vm64_vm0, %v59_v13, 0  ;;  %v409_v29 = vld [vmem:[#allocation3 + $0x40] sm:$0xff]  ;;  %v135_v34 = vld [vmem:[%s545_s4] sm:$0x3] }
  0x12   :  { %76 = vmatpush.bf16.msra.mxu2 %v65_v14  ;;  %89 = vmatpush.bf16.msra.mxu3 %v67_v15  ;;  %v137_v35 = vperm.slane %v135_v34, 0  ;;  %v138_v36 = vperm.slane %v135_v34, 1  ;;  %v420_v47 = vld [vmem:[%s547_s6] ss:$0 sm:$0xff]  ;;  %v422_v57 = vld [vmem:[#allocation2] ss:$0 sm:$0xff] }
  0x13   :  { %279 = vmatpush.bf16.msra.mxu0 %v406_v18  ;;  %v421_v52 = vld [vmem:[%s548_s7] ss:$0 sm:$0xff] }
  0x14   :  { %292 = vmatpush.bf16.msra.mxu1 %v414_v19 }
  0x15   :  { %323 = vmatmul.msk.bf16.vlgmr.msra.gmra.mxu2 %vm60_vm1, %v54_v16  ;;  %324 = vmatmul.msk.bf16.vlgmr.msra.gmra.mxu3 %vm60_vm1, %v54_v16 }
  0x16   :  { %116 = vmatpush.bf16.msrb.mxu2 %v328_v10  ;;  %129 = vmatpush.bf16.msrb.mxu3 %v332_v11 }
  0x17   :  { %280 = vmatpush.bf16.msra.mxu0 %v405_v20 }
  0x18   :  { %293 = vmatpush.bf16.msra.mxu1 %v413_v21 }
  0x1b   :  { %281 = vmatpush.bf16.msra.mxu0 %v404_v22 }
  0x1c   :  { %294 = vmatpush.bf16.msra.mxu1 %v412_v23 }
  0x1f   :  { %282 = vmatpush.bf16.msra.mxu0 %v403_v24 }
  0x20   :  { %295 = vmatpush.bf16.msra.mxu1 %v411_v25 }
  0x23   :  { %283 = vmatpush.bf16.msra.mxu0 %v402_v26 }
  0x24   :  { %296 = vmatpush.bf16.msra.mxu1 %v410_v27 }
  0x25   :  { %333 = vmatmul.msk.bf16.vlgmr.msrb.gmra.mxu2 %vm105_vm2, %v51_v17  ;;  %334 = vmatmul.msk.bf16.vlgmr.msrb.gmra.mxu3 %vm105_vm2, %v51_v17 }
  0x27   :  { %284 = vmatpush.bf16.msra.mxu0 %v401_v28 }
  0x28   :  { %297 = vmatpush.bf16.msra.mxu1 %v409_v29 }
  0x98   :  { %v78_v30 = vpop.f32.mrf.mxu2  ;;  %v91_v31 = vpop.f32.mrf.mxu3 }
  0xa0   :  { %v80_v32 = vpop.f32.mrf.mxu2  ;;  %v93_v33 = vpop.f32.mrf.mxu3 }
  0xa8   :  { %v118_v37 = vpop.f32.mrf.mxu2  ;;  %v131_v38 = vpop.f32.mrf.mxu3 }
  0xa9   :  { %v119_v39 = vadd.f32 %v118_v37, %v78_v30  ;;  %v132_v40 = vadd.f32 %v131_v38, %v91_v31 }
  0xab   :  { %v141_v41 = vadd.f32 %v137_v35, %v119_v39  ;;  %v142_v42 = vadd.f32 %v138_v36, %v132_v40 }
  0xad   :  { %v143_v43 = vpack.c.bf16 %v141_v41, %v141_v41  ;;  %v144_v44 = vpack.c.bf16 %v142_v42, %v142_v42 }
  0xaf   :  { %285 = vmatmul.bf16.vlgmr.msra.gmra.mxu0 %v143_v43  ;;  %298 = vmatmul.bf16.vlgmr.msra.gmra.mxu1 %v144_v44 }
  0xb0   :  { %v120_v45 = vpop.f32.mrf.mxu2  ;;  %v133_v46 = vpop.f32.mrf.mxu3 }
 0x12c   :  { %v286_v48 = vpop.f32.mrf.mxu0  ;;  %v299_v49 = vpop.f32.mrf.mxu1 }
 0x12d   :  { %v287_v50 = vadd.f32 %v420_v47, %v286_v48 }
 0x12f   :  { %v300_v51 = vadd.f32 %v299_v49, %v287_v50 }
 0x131   :  { %v303_v53 = vmax.f32 %v300_v51, 0.0 }
 0x133   :  { %v308_v54 = vmul.f32 %v421_v52, %v303_v53 }
 0x134   :  { %v288_v55 = vpop.f32.mrf.mxu0  ;;  %v301_v56 = vpop.f32.mrf.mxu1 }
 0x135   :  { %309 = vadd.xlane.f32.xlu0 %v308_v54 }
 0x1a8   :  { %v310_v58 = vpop.xlane.xlu0 %309 }
 0x1a9   :  { %v315_v59 = vadd.f32 %v422_v57, %v310_v58 }
 0x1ab   :  { %317 = vst.msk [vmem:[%s550_s9] sm:$0xff] %vm316_vm3, %v315_v59 }
 0x1ac   :  { %322 = vsyncpa [#allocation4], 1 }

</bundles_post_ra>
